<compile_context>
chip_gen: v7x
topology: tpu7x:2x2x1
jax: 0.10.0
libtpu: 0.0.40
codegen_flags: <defaults>
</compile_context>

<pallas_src>
import math
from functools import partial, lru_cache

import numpy as np
import jax
import jax.numpy as jnp
from jax.experimental import pallas as pl
from jax.experimental.pallas import tpu as pltpu


# ----------------------------------------------------------------------------
# Gaussian coefficients (same construction as torchvision.GaussianBlur).
# The 2-D kernel is outer(k1d, k1d) -> the blur is applied separably (7+7 taps).
# ----------------------------------------------------------------------------
def _gaussian_kernel1d(kernel_size: int, sigma: float):
    half = (kernel_size - 1) * 0.5
    x = np.linspace(-half, half, kernel_size)
    pdf = np.exp(-0.5 * (x / sigma) ** 2)
    k1d = (pdf / pdf.sum()).astype(np.float32)
    return tuple(float(v) for v in k1d)  # python floats -> baked-in constants


# ----------------------------------------------------------------------------
# Generation-aware VMEM policy (v5e/v6e: 128 MiB, v7x: 64 MiB per TensorCore).
# ----------------------------------------------------------------------------
@lru_cache(maxsize=1)
def _vmem_policy():
    cap = None
    try:
        cap = getattr(pltpu.get_tpu_info(), "vmem_capacity_bytes", None)
    except Exception:
        cap = None
    if not cap:
        cap = 64 * 1024 * 1024          # conservative fallback (v7x per-TC size)
    vmem_limit = (int(cap) * 3) // 4    # headroom for compiler-internal scratch
    block_budget = int(cap) // 2        # headroom for un-modeled intermediates
    return vmem_limit, block_budget


def _pick_channel_block(nc, h, w, pad, budget_bytes):
    """Largest channel block whose f32 working set fits the VMEM budget."""
    hp, wp = h + 2 * pad, w + 2 * pad
    per_chan = 4 * (3 * 2 * h * w        # pipelined in/out blocks, double-buffered
                    + hp * w + h * wp    # vertical / horizontal pad scratches
                    + h * w              # diff^2 accumulator scratch
                    + 3 * h * w)         # in-flight intermediates (acc_v, diff, ...)
    cblk = max(1, budget_bytes // per_chan)
    if nc >= 2:
        cblk = min(cblk, -(-nc // 2))    # keep >=2 blocks: megacore / v7x 2 TCs
    return int(min(cblk, nc))


# ----------------------------------------------------------------------------
# In-kernel reflect padding + separable blur (taps read from scratch refs).
# ----------------------------------------------------------------------------
def _reflect_pad_rows(x, p):
    """Reflect-pad axis 1 (rows): (C, H, W) -> (C, H + 2p, W)."""
    H = x.shape[1]
    top = [x[:, i:i + 1, :] for i in range(p, 0, -1)]
    bot = [x[:, i:i + 1, :] for i in range(H - 2, H - 2 - p, -1)]
    return jnp.concatenate(top + [x] + bot, axis=1)


def _reflect_pad_cols(x, p):
    """Reflect-pad axis 2 (cols): (C, H, W) -> (C, H, W + 2p)."""
    W = x.shape[2]
    left = [x[:, :, i:i + 1] for i in range(p, 0, -1)]
    right = [x[:, :, i:i + 1] for i in range(W - 2, W - 2 - p, -1)]
    return jnp.concatenate(left + [x] + right, axis=2)


def _separable_blur(x, k1d, pad, vpad_ref, hpad_ref):
    """Reflect-padded separable Gaussian blur of a (C, H, W) f32 block.

    Padded intermediates are staged in VMEM scratch and every tap is a shifted
    window of the scratch *ref* (sublane offsets vertically, lane offsets
    horizontally) so no value-slice relayouts land on the VALU.
    """
    C, H, W = x.shape
    K = len(k1d)
    vpad_ref[...] = _reflect_pad_rows(x, pad)           # (C, H+2p, W)
    acc_v = k1d[0] * vpad_ref[:, 0:H, :]
    for ky in range(1, K):
        acc_v = acc_v + k1d[ky] * vpad_ref[:, ky:ky + H, :]
    hpad_ref[...] = _reflect_pad_cols(acc_v, pad)       # (C, H, W+2p)
    out = k1d[0] * hpad_ref[:, :, 0:W]
    for kx in range(1, K):
        out = out + k1d[kx] * hpad_ref[:, :, kx:kx + W]
    return out


def _make_blur_kernel(k1d, pad):
    def blur_kernel(x_ref, o_ref, vpad_ref, hpad_ref):
        o_ref[...] = _separable_blur(x_ref[...], k1d, pad, vpad_ref, hpad_ref)
    return blur_kernel


def _make_loss_kernel(k1d, pad):
    def loss_kernel(cur_ref, init_ref, out_ref, vpad_ref, hpad_ref, acc_ref):
        j = pl.program_id(1)

        @pl.when(j == 0)
        def _init():
            acc_ref[...] = jnp.zeros_like(acc_ref)

        blurred = _separable_blur(cur_ref[...], k1d, pad, vpad_ref, hpad_ref)
        diff = init_ref[...] - blurred
        acc_ref[...] = acc_ref[...] + diff * diff   # elementwise only per step

        @pl.when(j == pl.num_programs(1) - 1)
        def _finalize():
            s = jnp.sum(acc_ref[...])               # one cross-lane reduce per p
            out_ref[...] = jnp.zeros(out_ref.shape, out_ref.dtype) + s
    return loss_kernel


# ----------------------------------------------------------------------------
# Pallas wrappers (jit-ed so reshape / cast / channel zero-pad fuse with call).
# ----------------------------------------------------------------------------
@partial(jax.jit, static_argnums=(1, 2))
def gaussian_blur_nchw(x, k1d, pad):
    """GaussianBlur of an NCHW tensor; reflect padding done inside the kernel."""
    N, C, H, W = x.shape
    assert H > pad and W > pad, "reflect padding needs H, W > kernel_size // 2"
    NC = N * C
    vmem_limit, budget = _vmem_policy()
    cblk = _pick_channel_block(NC, H, W, pad, budget)
    nb = pl.cdiv(NC, cblk)
    NCp = nb * cblk

    xf = jnp.reshape(x, (NC, H, W)).astype(jnp.float32)
    xf = jnp.pad(xf, ((0, NCp - NC), (0, 0), (0, 0)))   # zero-pad ragged channels

    out = pl.pallas_call(
        _make_blur_kernel(k1d, pad),
        out_shape=jax.ShapeDtypeStruct((NCp, H, W), jnp.float32),
        grid=(nb,),
        in_specs=[pl.BlockSpec((cblk, H, W), lambda i: (i, 0, 0))],
        out_specs=pl.BlockSpec((cblk, H, W), lambda i: (i, 0, 0)),
        scratch_shapes=[
            pltpu.VMEM((cblk, H + 2 * pad, W), jnp.float32),
            pltpu.VMEM((cblk, H, W + 2 * pad), jnp.float32),
        ],
        compiler_params=pltpu.CompilerParams(
            dimension_semantics=("parallel",),
            vmem_limit_bytes=vmem_limit,
        ),
    )(xf)
    return out[:NC].reshape(N, C, H, W)


@partial(jax.jit, static_argnums=(2, 3))
def tone_mse_pallas(cur_raster, init_blurred, k1d, pad):
    """mean((init_blurred - blur(cur_raster))**2); blur + reduction fused."""
    N, C, H, W = cur_raster.shape
    assert H > pad and W > pad, "reflect padding needs H, W > kernel_size // 2"
    NC = N * C
    vmem_limit, budget = _vmem_policy()
    cblk = _pick_channel_block(NC, H, W, pad, budget)
    nb = pl.cdiv(NC, cblk)
    P = 2 if nb >= 2 else 1                 # parallel axis -> v7x's 2 TensorCores
    nbj = pl.cdiv(nb, P)
    NCp = P * nbj * cblk                    # zero-padded channels contribute 0

    curf = jnp.reshape(cur_raster, (NC, H, W)).astype(jnp.float32)
    curf = jnp.pad(curf, ((0, NCp - NC), (0, 0), (0, 0)))
    initf = jnp.reshape(init_blurred, (NC, H, W)).astype(jnp.float32)
    initf = jnp.pad(initf, ((0, NCp - NC), (0, 0), (0, 0)))

    chan_map = lambda p, j: (p * nbj + j, 0, 0)

    partials = pl.pallas_call(
        _make_loss_kernel(k1d, pad),
        out_shape=jax.ShapeDtypeStruct((P, 8, 128), jnp.float32),
        grid=(P, nbj),
        in_specs=[
            pl.BlockSpec((cblk, H, W), chan_map),
            pl.BlockSpec((cblk, H, W), chan_map),
        ],
        out_specs=pl.BlockSpec((1, 8, 128), lambda p, j: (p, 0, 0)),
        scratch_shapes=[
            pltpu.VMEM((cblk, H + 2 * pad, W), jnp.float32),
            pltpu.VMEM((cblk, H, W + 2 * pad), jnp.float32),
            pltpu.VMEM((cblk, H, W), jnp.float32),
        ],
        compiler_params=pltpu.CompilerParams(
            dimension_semantics=("parallel", "arbitrary"),
            vmem_limit_bytes=vmem_limit,
        ),
    )(curf, initf)

    inv_count = 1.0 / float(NC * H * W)     # nn.MSELoss default: mean over elems
    return jnp.sum(partials[:, 0, 0]) * inv_count


# ----------------------------------------------------------------------------
# ToneLoss equivalent
# ----------------------------------------------------------------------------
class ToneLossPallas:
    def __init__(self, dist_loss_weight=1.0, kernel_size=7, sigma=2.0):
        self.dist_loss_weight = float(dist_loss_weight)
        self.kernel_size = int(kernel_size)
        self.sigma = float(sigma)
        self.pad = self.kernel_size // 2
        self.k1d = _gaussian_kernel1d(self.kernel_size, self.sigma)
        self.init_blurred = None

    def set_image_init(self, im_init_hwc):
        # matches: im_init.permute(2, 0, 1).unsqueeze(0) then GaussianBlur
        x = jnp.transpose(im_init_hwc, (2, 0, 1))[None]   # (1, C, H, W)
        self.init_blurred = gaussian_blur_nchw(x, self.k1d, self.pad)

    def get_scheduler(self, step=None):
        if step is not None:
            return self.dist_loss_weight * math.exp(
                -(1.0 / 5.0) * ((step - 300) / 20.0) ** 2)
        return self.dist_loss_weight

    def __call__(self, cur_raster, step=None):
        mse = tone_mse_pallas(cur_raster, self.init_blurred, self.k1d, self.pad)
        return mse * self.get_scheduler(step)


# ----------------------------------------------------------------------------
# Pure-JAX reference: full 49-tap 2-D conv + mean, for verification.
# ----------------------------------------------------------------------------
def _reference_tone_mse(cur_raster, im_init_hwc, kernel_size, sigma, pad):
    k1d = np.asarray(_gaussian_kernel1d(kernel_size, sigma), dtype=np.float32)
    k2d = np.outer(k1d, k1d)

    def blur(x):  # x: (N, C, H, W)
        H, W = x.shape[2], x.shape[3]
        xp = jnp.pad(x, ((0, 0), (0, 0), (pad, pad), (pad, pad)), mode="reflect")
        acc = jnp.zeros_like(x)
        for ky in range(kernel_size):
            for kx in range(kernel_size):
                acc = acc + k2d[ky, kx] * xp[:, :, ky:ky + H, kx:kx + W]
        return acc

    init = jnp.transpose(im_init_hwc, (2, 0, 1))[None]
    return jnp.mean((blur(init) - blur(cur_raster)) ** 2)


if __name__ == "__main__":
    key = jax.random.PRNGKey(0)
    k1, k2 = jax.random.split(key)

    H, W, C = 32, 32, 3
    im_init = jax.random.uniform(k1, (H, W, C), dtype=jnp.float32)        # HWC init
    cur_raster = jax.random.uniform(k2, (1, C, H, W), dtype=jnp.float32)  # NCHW raster

    tone_loss = ToneLossPallas(dist_loss_weight=1.0, kernel_size=7, sigma=2.0)
    tone_loss.set_image_init(im_init)

    loss_no_step = tone_loss(cur_raster)            # scheduler = dist_loss_weight
    loss_step = tone_loss(cur_raster, step=310)     # gaussian-scheduled weight
    jax.block_until_ready((loss_no_step, loss_step))

    # correctness check against the pure-JAX 2-D-conv reference
    ref = _reference_tone_mse(cur_raster, im_init, 7, 2.0, 3)
    np.testing.assert_allclose(np.asarray(loss_no_step), np.asarray(ref),
                               rtol=1e-4, atol=1e-6)
    np.testing.assert_allclose(np.asarray(loss_step),
                               np.asarray(ref) * tone_loss.get_scheduler(310),
                               rtol=1e-4, atol=1e-6)

    print("KERNEL_OK")
</pallas_src>

<mosaic_0001>
module attributes {stable_mosaic.version = 11 : i64} {
  func.func @blur_kernel(%arg0: i32, %arg1: memref<2x32x32xf32, #tpu.memory_space<vmem>>, %arg2: memref<2x32x32xf32, #tpu.memory_space<vmem>>, %arg3: memref<2x38x32xf32, #tpu.memory_space<vmem>>, %arg4: memref<2x32x38xf32, #tpu.memory_space<vmem>>) attributes {dimension_semantics = [#tpu.dimension_semantics<parallel>], iteration_bounds = array<i64: 2>, scalar_prefetch = 0 : i64, scratch_operands = 2 : i64, tpu.core_type = #tpu.core_type<tc>, window_params = [{transform_indices = @transform_0, window_bounds = array<i64: 2, 32, 32>}, {transform_indices = @transform_1, window_bounds = array<i64: 2, 32, 32>}]} {
    %c0 = arith.constant 0 : index
    %c0_0 = arith.constant 0 : index
    %c0_1 = arith.constant 0 : index
    %0 = vector.load %arg1[%c0, %c0_0, %c0_1] : memref<2x32x32xf32, #tpu.memory_space<vmem>>, vector<2x32x32xf32>
    %1 = vector.extract_strided_slice %0 {offsets = [0, 3, 0], sizes = [2, 1, 32], strides = [1, 1, 1]} : vector<2x32x32xf32> to vector<2x1x32xf32>
    %2 = vector.extract_strided_slice %0 {offsets = [0, 2, 0], sizes = [2, 1, 32], strides = [1, 1, 1]} : vector<2x32x32xf32> to vector<2x1x32xf32>
    %3 = vector.extract_strided_slice %0 {offsets = [0, 1, 0], sizes = [2, 1, 32], strides = [1, 1, 1]} : vector<2x32x32xf32> to vector<2x1x32xf32>
    %4 = vector.extract_strided_slice %0 {offsets = [0, 30, 0], sizes = [2, 1, 32], strides = [1, 1, 1]} : vector<2x32x32xf32> to vector<2x1x32xf32>
    %5 = vector.extract_strided_slice %0 {offsets = [0, 29, 0], sizes = [2, 1, 32], strides = [1, 1, 1]} : vector<2x32x32xf32> to vector<2x1x32xf32>
    %6 = vector.extract_strided_slice %0 {offsets = [0, 28, 0], sizes = [2, 1, 32], strides = [1, 1, 1]} : vector<2x32x32xf32> to vector<2x1x32xf32>
    %7 = tpu.concatenate %1, %2, %3, %0, %4, %5, %6 in 1 : vector<2x1x32xf32>, vector<2x1x32xf32>, vector<2x1x32xf32>, vector<2x32x32xf32>, vector<2x1x32xf32>, vector<2x1x32xf32>, vector<2x1x32xf32> -> vector<2x38x32xf32>
    %c0_2 = arith.constant 0 : index
    %c0_3 = arith.constant 0 : index
    %c0_4 = arith.constant 0 : index
    %8 = vector.load %arg3[%c0_2, %c0_3, %c0_4] : memref<2x38x32xf32, #tpu.memory_space<vmem>>, vector<2x38x32xf32>
    tpu.vector_store %arg3[%c0_2, %c0_3, %c0_4], %7 {strides = array<i32>} : memref<2x38x32xf32, #tpu.memory_space<vmem>>, vector<2x38x32xf32>,
    %c0_5 = arith.constant 0 : index
    %c0_6 = arith.constant 0 : index
    %c0_7 = arith.constant 0 : index
    %9 = vector.load %arg3[%c0_5, %c0_6, %c0_7] : memref<2x38x32xf32, #tpu.memory_space<vmem>>, vector<2x32x32xf32>
    %cst = arith.constant 0.0701593235 : f32
    %10 = vector.broadcast %cst : f32 to vector<2x32x32xf32>
    %11 = arith.mulf %10, %9 : vector<2x32x32xf32>
    %c0_8 = arith.constant 0 : index
    %c1 = arith.constant 1 : index
    %c0_9 = arith.constant 0 : index
    %12 = vector.load %arg3[%c0_8, %c1, %c0_9] : memref<2x38x32xf32, #tpu.memory_space<vmem>>, vector<2x32x32xf32>
    %cst_10 = arith.constant 0.131074876 : f32
    %13 = vector.broadcast %cst_10 : f32 to vector<2x32x32xf32>
    %14 = arith.mulf %13, %12 : vector<2x32x32xf32>
    %15 = arith.addf %11, %14 : vector<2x32x32xf32>
    %c0_11 = arith.constant 0 : index
    %c2 = arith.constant 2 : index
    %c0_12 = arith.constant 0 : index
    %16 = vector.load %arg3[%c0_11, %c2, %c0_12] : memref<2x38x32xf32, #tpu.memory_space<vmem>>, vector<2x32x32xf32>
    %cst_13 = arith.constant 0.190712824 : f32
    %17 = vector.broadcast %cst_13 : f32 to vector<2x32x32xf32>
    %18 = arith.mulf %17, %16 : vector<2x32x32xf32>
    %19 = arith.addf %15, %18 : vector<2x32x32xf32>
    %c0_14 = arith.constant 0 : index
    %c3 = arith.constant 3 : index
    %c0_15 = arith.constant 0 : index
    %20 = vector.load %arg3[%c0_14, %c3, %c0_15] : memref<2x38x32xf32, #tpu.memory_space<vmem>>, vector<2x32x32xf32>
    %cst_16 = arith.constant 0.216105938 : f32
    %21 = vector.broadcast %cst_16 : f32 to vector<2x32x32xf32>
    %22 = arith.mulf %21, %20 : vector<2x32x32xf32>
    %23 = arith.addf %19, %22 : vector<2x32x32xf32>
    %c0_17 = arith.constant 0 : index
    %c4 = arith.constant 4 : index
    %c0_18 = arith.constant 0 : index
    %24 = vector.load %arg3[%c0_17, %c4, %c0_18] : memref<2x38x32xf32, #tpu.memory_space<vmem>>, vector<2x32x32xf32>
    %cst_19 = arith.constant 0.190712824 : f32
    %25 = vector.broadcast %cst_19 : f32 to vector<2x32x32xf32>
    %26 = arith.mulf %25, %24 : vector<2x32x32xf32>
    %27 = arith.addf %23, %26 : vector<2x32x32xf32>
    %c0_20 = arith.constant 0 : index
    %c5 = arith.constant 5 : index
    %c0_21 = arith.constant 0 : index
    %28 = vector.load %arg3[%c0_20, %c5, %c0_21] : memref<2x38x32xf32, #tpu.memory_space<vmem>>, vector<2x32x32xf32>
    %cst_22 = arith.constant 0.131074876 : f32
    %29 = vector.broadcast %cst_22 : f32 to vector<2x32x32xf32>
    %30 = arith.mulf %29, %28 : vector<2x32x32xf32>
    %31 = arith.addf %27, %30 : vector<2x32x32xf32>
    %c0_23 = arith.constant 0 : index
    %c6 = arith.constant 6 : index
    %c0_24 = arith.constant 0 : index
    %32 = vector.load %arg3[%c0_23, %c6, %c0_24] : memref<2x38x32xf32, #tpu.memory_space<vmem>>, vector<2x32x32xf32>
    %cst_25 = arith.constant 0.0701593235 : f32
    %33 = vector.broadcast %cst_25 : f32 to vector<2x32x32xf32>
    %34 = arith.mulf %33, %32 : vector<2x32x32xf32>
    %35 = arith.addf %31, %34 : vector<2x32x32xf32>
    %36 = vector.extract_strided_slice %35 {offsets = [0, 0, 3], sizes = [2, 32, 1], strides = [1, 1, 1]} : vector<2x32x32xf32> to vector<2x32x1xf32>
    %37 = vector.extract_strided_slice %35 {offsets = [0, 0, 2], sizes = [2, 32, 1], strides = [1, 1, 1]} : vector<2x32x32xf32> to vector<2x32x1xf32>
    %38 = vector.extract_strided_slice %35 {offsets = [0, 0, 1], sizes = [2, 32, 1], strides = [1, 1, 1]} : vector<2x32x32xf32> to vector<2x32x1xf32>
    %39 = vector.extract_strided_slice %35 {offsets = [0, 0, 30], sizes = [2, 32, 1], strides = [1, 1, 1]} : vector<2x32x32xf32> to vector<2x32x1xf32>
    %40 = vector.extract_strided_slice %35 {offsets = [0, 0, 29], sizes = [2, 32, 1], strides = [1, 1, 1]} : vector<2x32x32xf32> to vector<2x32x1xf32>
    %41 = vector.extract_strided_slice %35 {offsets = [0, 0, 28], sizes = [2, 32, 1], strides = [1, 1, 1]} : vector<2x32x32xf32> to vector<2x32x1xf32>
    %42 = tpu.concatenate %36, %37, %38, %35, %39, %40, %41 in 2 : vector<2x32x1xf32>, vector<2x32x1xf32>, vector<2x32x1xf32>, vector<2x32x32xf32>, vector<2x32x1xf32>, vector<2x32x1xf32>, vector<2x32x1xf32> -> vector<2x32x38xf32>
    %c0_26 = arith.constant 0 : index
    %c0_27 = arith.constant 0 : index
    %c0_28 = arith.constant 0 : index
    %43 = vector.load %arg4[%c0_26, %c0_27, %c0_28] : memref<2x32x38xf32, #tpu.memory_space<vmem>>, vector<2x32x38xf32>
    tpu.vector_store %arg4[%c0_26, %c0_27, %c0_28], %42 {strides = array<i32>} : memref<2x32x38xf32, #tpu.memory_space<vmem>>, vector<2x32x38xf32>,
    %c0_29 = arith.constant 0 : index
    %c0_30 = arith.constant 0 : index
    %c0_31 = arith.constant 0 : index
    %44 = vector.load %arg4[%c0_29, %c0_30, %c0_31] : memref<2x32x38xf32, #tpu.memory_space<vmem>>, vector<2x32x32xf32>
    %cst_32 = arith.constant 0.0701593235 : f32
    %45 = vector.broadcast %cst_32 : f32 to vector<2x32x32xf32>
    %46 = arith.mulf %45, %44 : vector<2x32x32xf32>
    %c0_33 = arith.constant 0 : index
    %c0_34 = arith.constant 0 : index
    %c1_35 = arith.constant 1 : index
    %47 = vector.load %arg4[%c0_33, %c0_34, %c1_35] : memref<2x32x38xf32, #tpu.memory_space<vmem>>, vector<2x32x32xf32>
    %cst_36 = arith.constant 0.131074876 : f32
    %48 = vector.broadcast %cst_36 : f32 to vector<2x32x32xf32>
    %49 = arith.mulf %48, %47 : vector<2x32x32xf32>
    %50 = arith.addf %46, %49 : vector<2x32x32xf32>
    %c0_37 = arith.constant 0 : index
    %c0_38 = arith.constant 0 : index
    %c2_39 = arith.constant 2 : index
    %51 = vector.load %arg4[%c0_37, %c0_38, %c2_39] : memref<2x32x38xf32, #tpu.memory_space<vmem>>, vector<2x32x32xf32>
    %cst_40 = arith.constant 0.190712824 : f32
    %52 = vector.broadcast %cst_40 : f32 to vector<2x32x32xf32>
    %53 = arith.mulf %52, %51 : vector<2x32x32xf32>
    %54 = arith.addf %50, %53 : vector<2x32x32xf32>
    %c0_41 = arith.constant 0 : index
    %c0_42 = arith.constant 0 : index
    %c3_43 = arith.constant 3 : index
    %55 = vector.load %arg4[%c0_41, %c0_42, %c3_43] : memref<2x32x38xf32, #tpu.memory_space<vmem>>, vector<2x32x32xf32>
    %cst_44 = arith.constant 0.216105938 : f32
    %56 = vector.broadcast %cst_44 : f32 to vector<2x32x32xf32>
    %57 = arith.mulf %56, %55 : vector<2x32x32xf32>
    %58 = arith.addf %54, %57 : vector<2x32x32xf32>
    %c0_45 = arith.constant 0 : index
    %c0_46 = arith.constant 0 : index
    %c4_47 = arith.constant 4 : index
    %59 = vector.load %arg4[%c0_45, %c0_46, %c4_47] : memref<2x32x38xf32, #tpu.memory_space<vmem>>, vector<2x32x32xf32>
    %cst_48 = arith.constant 0.190712824 : f32
    %60 = vector.broadcast %cst_48 : f32 to vector<2x32x32xf32>
    %61 = arith.mulf %60, %59 : vector<2x32x32xf32>
    %62 = arith.addf %58, %61 : vector<2x32x32xf32>
    %c0_49 = arith.constant 0 : index
    %c0_50 = arith.constant 0 : index
    %c5_51 = arith.constant 5 : index
    %63 = vector.load %arg4[%c0_49, %c0_50, %c5_51] : memref<2x32x38xf32, #tpu.memory_space<vmem>>, vector<2x32x32xf32>
    %cst_52 = arith.constant 0.131074876 : f32
    %64 = vector.broadcast %cst_52 : f32 to vector<2x32x32xf32>
    %65 = arith.mulf %64, %63 : vector<2x32x32xf32>
    %66 = arith.addf %62, %65 : vector<2x32x32xf32>
    %c0_53 = arith.constant 0 : index
    %c0_54 = arith.constant 0 : index
    %c6_55 = arith.constant 6 : index
    %67 = vector.load %arg4[%c0_53, %c0_54, %c6_55] : memref<2x32x38xf32, #tpu.memory_space<vmem>>, vector<2x32x32xf32>
    %cst_56 = arith.constant 0.0701593235 : f32
    %68 = vector.broadcast %cst_56 : f32 to vector<2x32x32xf32>
    %69 = arith.mulf %68, %67 : vector<2x32x32xf32>
    %70 = arith.addf %66, %69 : vector<2x32x32xf32>
    %c0_57 = arith.constant 0 : index
    %c0_58 = arith.constant 0 : index
    %c0_59 = arith.constant 0 : index
    %71 = vector.load %arg2[%c0_57, %c0_58, %c0_59] : memref<2x32x32xf32, #tpu.memory_space<vmem>>, vector<2x32x32xf32>
    tpu.vector_store %arg2[%c0_57, %c0_58, %c0_59], %70 {strides = array<i32>} : memref<2x32x32xf32, #tpu.memory_space<vmem>>, vector<2x32x32xf32>,
    return
  }
  func.func @transform_0(%arg0: i32) -> (i32, i32, i32) {
    %c0_i32 = arith.constant 0 : i32
    %c0_i32_0 = arith.constant 0 : i32
    %c0_i32_1 = arith.constant 0 : i32
    return %arg0, %c0_i32, %c0_i32_0 : i32, i32, i32
  }
  func.func @transform_1(%arg0: i32) -> (i32, i32, i32) {
    %c0_i32 = arith.constant 0 : i32
    %c0_i32_0 = arith.constant 0 : i32
    %c0_i32_1 = arith.constant 0 : i32
    return %arg0, %c0_i32, %c0_i32_0 : i32, i32, i32
  }
}

</mosaic_0001>

<bundles_post_ra>
// kernel: gaussian_blur_nchw.1
= control target key start
LH: loop header
LB: loop body
LE: loop exit
PB: predicated region body
PF: predicated region fallthrough
CT: control target
= control target key end

     0   :  { %s1010_s6 = smov 0   ;;  %s1312_s0 = inlined_call_operand.vmem [shape: f32[4,32,32], index: 0, kind: input, shape index: {}]   ;;  %s1313_s1 = inlined_call_operand.vmem [shape: f32[4,32,32], index: 1, kind: output, shape index: {}]  }
   0x1 LB: > { %s947_s7 = sadd.s32 4294967295, %s987_s6   ;;  %p951_p0 = scmp.ge.s32.totalorder %s987_s6, 1  ;;  %s987_s6 = sphi %s1010_s6, %s11_s6  }
   0x2   : > { %p89_p1 = scmp.lt.s32.totalorder %s987_s6, 3 }
   0x4   : > { %p90_p2 = pnand %p951_p0, %p89_p1 }
   0x5   : > { %s952_s8 = sshll.u32 (!%p90_p2), %s947_s7, 1  ;;  %vm153_vm0 = vcmask (!%p90_p2), 1042432   ;;  %vm206_vm1 = vcmask (!%p90_p2), 261120   ;;  %vm190_vm2 = vcmask (!%p90_p2), 1040384   ;;  %vm193_vm3 = vcmask (!%p90_p2), 1041408   ;;  %s989_s13 = smov (!%p90_p2), 125  }
   0x6   : > { %93 = sbr.rel (%p90_p2) target bundleno = 486 (0x1e6), region = 24  ;;  %p112_p3 = scmp.lt.s32.totalorder (!%p90_p2), %s952_s8, 3  ;;  %vm200_vm4 = vcmask (!%p90_p2), 1043456   ;;  %vm203_vm5 = vcmask (!%p90_p2), 1044480   ;;  %vm211_vm6 = vcmask (!%p90_p2), 259072   ;;  %vm554_vm7 = vcmask (!%p90_p2), 7168  }
   0x7   : > { %s990_s14 = smov (!%p90_p2), 127   ;;  %s991_s15 = smov (!%p90_p2), 1   ;;  %vm563_vm8 = vcmask (!%p90_p2), 15360   ;;  %vm572_vm9 = vcmask (!%p90_p2), 23552   ;;  %vm581_vm10 = vcmask (!%p90_p2), 285696   ;;  %vm590_vm11 = vcmask (!%p90_p2), 293888  }
   0x8   : > { %s992_s16 = smov (!%p90_p2), 3   ;;  %s993_s17 = smov (!%p90_p2), 5   ;;  %vm599_vm12 = vcmask (!%p90_p2), 302080   ;;  %vm608_vm13 = vcmask (!%p90_p2), 310272  }
   0x9   : > { %s994_s18 = smov (!%p90_p2), 7   ;;  %s995_s19 = smov (!%p90_p2), 9  }
   0xa   : > { %s996_s20 = smov (!%p90_p2), 126   ;;  %s997_s21 = smov (!%p90_p2), 124  }
   0xb   : > { %s998_s22 = smov (!%p90_p2), 123   ;;  %s999_s23 = smov (!%p90_p2), 122  }
   0xd   : > { %s1315_s8 = smov (!%p112_p3, %s952_s8), 3 }
   0xe   : > { %s960_s9 = sshll.u32 %s1315_s8, 5 }
   0xf   : > { %s116_s12 = scalar_lea.vmem %s1312_s0, %s960_s9  ;;  %s1288_s26 = scalar_lea.vmem %s1313_s1, %s960_s9 }
  0x10   : > { %v126_v0 = vld [vmem:[%s116_s12 + $0x8] sm:$0xff]  ;;  %v127_v1 = vld [vmem:[%s116_s12 + $0x10] sm:$0xff]  ;;  %v128_v2 = vld [vmem:[%s116_s12 + $0x18] sm:$0xff] }
  0x11   : > { %v155_v3 = vrot.slane %v126_v0, 5  ;;  %v157_v4 = vrot.slane %v127_v1, 5  ;;  %v159_v5 = vrot.slane %v128_v2, 5  ;;  %v125_v6 = vld [vmem:[%s116_s12] sm:$0xff]  ;;  %v130_v8 = vld [vmem:[%s116_s12 + $0x28] sm:$0xff]  ;;  %v131_v10 = vld [vmem:[%s116_s12 + $0x30] sm:$0xff] }
  0x12   : > { %v129_v7 = vld [vmem:[%s116_s12 + $0x20] sm:$0xff]  ;;  %v154_v9 = vrot.slane %v125_v6, 5  ;;  %v162_v12 = vrot.slane %v130_v8, 5  ;;  %v132_v13 = vld [vmem:[%s116_s12 + $0x38] sm:$0xff]  ;;  %v135_v14 = vrot.slane %v125_v6, 3  ;;  %v164_v17 = vrot.slane %v131_v10, 5 }
  0x13   : > { %v161_v11 = vrot.slane %v129_v7, 5  ;;  %v158_v15 = vsel %vm153_vm0, %v155_v3, %v157_v4  ;;  %v160_v16 = vsel %vm153_vm0, %v157_v4, %v159_v5  ;;  %v166_v18 = vrot.slane %v132_v13, 5 }
  0x14   : > { %209 = vst.msk [vmem:[#allocation2 + $0x10] sm:$0xff] %vm206_vm1, %v158_v15  ;;  %210 = vst.msk [vmem:[#allocation2 + $0x18] sm:$0xff] %vm206_vm1, %v160_v16  ;;  %v156_v19 = vsel %vm153_vm0, %v154_v9, %v155_v3  ;;  %v139_v21 = vrot.slane %v125_v6, 1  ;;  %v143_v22 = vrot.slane %v125_v6, 7  ;;  %v165_v23 = vsel %vm153_vm0, %v162_v12, %v164_v17 }
  0x15   : > { %v163_v20 = vsel %vm153_vm0, %v161_v11, %v162_v12  ;;  %208 = vst.msk [vmem:[#allocation2 + $0x8] sm:$0xff] %vm206_vm1, %v156_v19  ;;  %v167_v24 = vsel %vm153_vm0, %v164_v17, %v166_v18  ;;  %v178_v25 = vrot.slane %v128_v2, 3  ;;  %v182_v26 = vrot.slane %v128_v2, 1  ;;  %215 = vst.msk [vmem:[#allocation2 + $0x38] sm:$0xff] %vm206_vm1, %v165_v23 }
  0x16   : > { %214 = vst.msk [vmem:[#allocation2 + $0x30] sm:$0xff] %vm206_vm1, %v163_v20  ;;  %216 = vst.msk [vmem:[#allocation2 + $0x40] sm:$0xff] %vm206_vm1, %v167_v24  ;;  %v191_v27 = vsel %vm190_vm2, %v135_v14, %v139_v21  ;;  %v186_v28 = vrot.slane %v128_v2, 7  ;;  %v136_v29 = vrot.slane %v129_v7, 3  ;;  %v140_v30 = vrot.slane %v129_v7, 1 }
  0x17   : > { %v194_v31 = vsel %vm193_vm3, %v191_v27, %v143_v22  ;;  %v198_v32 = vsel %vm153_vm0, %v159_v5, %v178_v25  ;;  %v144_v33 = vrot.slane %v129_v7, 7  ;;  %v179_v34 = vrot.slane %v132_v13, 3 }
  0x18   : > { %v196_v35 = vsel %vm153_vm0, %v194_v31, %v154_v9  ;;  %v201_v36 = vsel %vm200_vm4, %v198_v32, %v182_v26  ;;  %v192_v37 = vsel %vm190_vm2, %v136_v29, %v140_v30  ;;  %v183_v38 = vrot.slane %v132_v13, 1 }
  0x19   : > { %207 = vst.msk [vmem:[#allocation2] sm:$0xff] %vm206_vm1, %v196_v35  ;;  %v204_v39 = vsel %vm203_vm5, %v201_v36, %v186_v28  ;;  %v195_v40 = vsel %vm193_vm3, %v192_v37, %v144_v33  ;;  %v187_v41 = vrot.slane %v132_v13, 7  ;;  %v199_v42 = vsel %vm153_vm0, %v166_v18, %v179_v34 }
  0x1a   : > { %212 = vst.msk [vmem:[#allocation2 + $0x20] sm:$0x3f] %vm211_vm6, %v204_v39  ;;  %v197_v43 = vsel %vm153_vm0, %v195_v40, %v161_v11  ;;  %v202_v44 = vsel %vm200_vm4, %v199_v42, %v183_v38 }
  0x1b   : > { %v220_v45 = vld [vmem:[#allocation2 + $0x10] sm:$0xff]  ;;  %213 = vst.msk [vmem:[#allocation2 + $0x28] sm:$0xff] %vm206_vm1, %v197_v43  ;;  %v205_v48 = vsel %vm203_vm5, %v202_v44, %v187_v41 }
  0x1c   : > { %v236_v46 = vld [vmem:[#allocation2 + $0x11] sm:$0xff]  ;;  %v228_v49 = vmul.f32 0.07015932, %v220_v45  ;;  %217 = vst.msk [vmem:[#allocation2 + $0x48] sm:$0x3f] %vm211_vm6, %v205_v48  ;;  %v219_v58 = vld [vmem:[#allocation2 + $0x8] sm:$0xff] }
  0x1d   : > { %v260_v47 = vld [vmem:[#allocation2 + $0x12] sm:$0xff]  ;;  %v244_v50 = vmul.f32 0.13107488, %v236_v46  ;;  %v235_v59 = vld [vmem:[#allocation2 + $0x9] sm:$0xff]  ;;  %v227_v62 = vmul.f32 0.07015932, %v219_v58 }
  0x1e   : > { %v268_v51 = vmul.f32 0.19071282, %v260_v47  ;;  %v284_v52 = vld [vmem:[#allocation2 + $0x13] sm:$0xff]  ;;  %v243_v63 = vmul.f32 0.13107488, %v235_v59  ;;  %v259_v1 = vld [vmem:[#allocation2 + $0xa] sm:$0xff] }
  0x1f   : > { %v308_v53 = vld [vmem:[#allocation2 + $0x14] sm:$0xff]  ;;  %v252_v54 = vadd.f32 %v244_v50, %v228_v49  ;;  %v292_v55 = vmul.f32 0.21610594, %v284_v52  ;;  %v283_v2 = vld [vmem:[#allocation2 + $0xb] sm:$0xff]  ;;  %v267_v6 = vmul.f32 0.19071282, %v259_v1 }
  0x20   : > { %v332_v56 = vld [vmem:[#allocation2 + $0x15] sm:$0xff]  ;;  %v316_v57 = vmul.f32 0.19071282, %v308_v53  ;;  %v307_v3 = vld [vmem:[#allocation2 + $0xc] sm:$0xff]  ;;  %v251_v5 = vadd.f32 %v243_v63, %v227_v62  ;;  %v291_v7 = vmul.f32 0.21610594, %v283_v2 }
  0x21   : > { %v276_v60 = vadd.f32 %v268_v51, %v252_v54  ;;  %v356_v61 = vld [vmem:[#allocation2 + $0x16] sm:$0xff]  ;;  %v340_v0 = vmul.f32 0.13107488, %v332_v56  ;;  %v331_v9 = vld [vmem:[#allocation2 + $0xd] sm:$0xff]  ;;  %v315_v13 = vmul.f32 0.19071282, %v307_v3 }
  0x22   : > { %v364_v8 = vmul.f32 0.07015932, %v356_v61  ;;  %v355_v10 = vld [vmem:[#allocation2 + $0xe] sm:$0xff]  ;;  %v275_v12 = vadd.f32 %v267_v6, %v251_v5  ;;  %v339_v22 = vmul.f32 0.13107488, %v331_v9  ;;  %v224_v32 = vld [vmem:[#allocation2 + $0x38] sm:$0xff] }
  0x23   : > { %v300_v4 = vadd.f32 %v292_v55, %v276_v60  ;;  %v223_v14 = vld [vmem:[#allocation2 + $0x30] sm:$0xff]  ;;  %v363_v30 = vmul.f32 0.07015932, %v355_v10  ;;  %v240_v33 = vld [vmem:[#allocation2 + $0x39] sm:$0xff]  ;;  %v232_v36 = vmul.f32 0.07015932, %v224_v32 }
  0x24   : > { %v239_v15 = vld [vmem:[#allocation2 + $0x31] sm:$0xff]  ;;  %v231_v17 = vmul.f32 0.07015932, %v223_v14  ;;  %v299_v21 = vadd.f32 %v291_v7, %v275_v12  ;;  %v248_v37 = vmul.f32 0.13107488, %v240_v33  ;;  %v264_v40 = vld [vmem:[#allocation2 + $0x3a] sm:$0xff] }
  0x25   : > { %v324_v11 = vadd.f32 %v316_v57, %v300_v4  ;;  %v263_v16 = vld [vmem:[#allocation2 + $0x32] sm:$0xff]  ;;  %v247_v18 = vmul.f32 0.13107488, %v239_v15  ;;  %v288_v41 = vld [vmem:[#allocation2 + $0x3b] sm:$0xff]  ;;  %v272_v45 = vmul.f32 0.19071282, %v264_v40 }
  0x26   : > { %v271_v19 = vmul.f32 0.19071282, %v263_v16  ;;  %v287_v23 = vld [vmem:[#allocation2 + $0x33] sm:$0xff]  ;;  %v323_v29 = vadd.f32 %v315_v13, %v299_v21  ;;  %v312_v42 = vld [vmem:[#allocation2 + $0x3c] sm:$0xff]  ;;  %v256_v44 = vadd.f32 %v248_v37, %v232_v36  ;;  %v296_v46 = vmul.f32 0.21610594, %v288_v41 }
  0x27   : > { %v348_v20 = vadd.f32 %v340_v0, %v324_v11  ;;  %v311_v24 = vld [vmem:[#allocation2 + $0x34] sm:$0xff]  ;;  %v255_v25 = vadd.f32 %v247_v18, %v231_v17  ;;  %v295_v26 = vmul.f32 0.21610594, %v287_v23  ;;  %v336_v49 = vld [vmem:[#allocation2 + $0x3d] sm:$0xff]  ;;  %v320_v53 = vmul.f32 0.19071282, %v312_v42 }
  0x28   : > { %v335_v27 = vld [vmem:[#allocation2 + $0x35] sm:$0xff]  ;;  %v319_v31 = vmul.f32 0.19071282, %v311_v24  ;;  %v347_v38 = vadd.f32 %v339_v22, %v323_v29  ;;  %v360_v50 = vld [vmem:[#allocation2 + $0x3e] sm:$0xff]  ;;  %v280_v52 = vadd.f32 %v272_v45, %v256_v44  ;;  %v344_v62 = vmul.f32 0.13107488, %v336_v49 }
  0x29   : > { %v1054_v28 = vadd.f32 %v364_v8, %v348_v20  ;;  %v279_v34 = vadd.f32 %v271_v19, %v255_v25  ;;  %v359_v35 = vld [vmem:[#allocation2 + $0x36] sm:$0xff]  ;;  %v343_v39 = vmul.f32 0.13107488, %v335_v27  ;;  %v218_v54 = vld [vmem:[#allocation2] sm:$0xff]  ;;  %v368_v5 = vmul.f32 0.07015932, %v360_v50 }
  0x2a   : > { %v1058_v47 = vadd.f32 %v363_v30, %v347_v38  ;;  %v367_v48 = vmul.f32 0.07015932, %v359_v35  ;;  %v234_v55 = vld [vmem:[#allocation2 + $0x1] sm:$0xff]  ;;  %v226_v57 = vmul.f32 0.07015932, %v218_v54  ;;  %v304_v61 = vadd.f32 %v296_v46, %v280_v52  ;;  %v221_v7 = vld [vmem:[#allocation2 + $0x18] sm:$0xff] }
  0x2b   : > { %390 = vrot.lane.b32.xlu1 %v1054_v28, %s989_s13  ;;  %v303_v43 = vadd.f32 %v295_v26, %v279_v34  ;;  %v258_v56 = vld [vmem:[#allocation2 + $0x2] sm:$0xff]  ;;  %v242_v58 = vmul.f32 0.13107488, %v234_v55  ;;  %v237_v8 = vld [vmem:[#allocation2 + $0x19] sm:$0xff]  ;;  %v229_v11 = vmul.f32 0.07015932, %v221_v7 }
  0x2c   : > { %388 = vrot.lane.b32.xlu0 %v1058_v47, %s989_s13  ;;  %v266_v59 = vmul.f32 0.19071282, %v258_v56  ;;  %v282_v63 = vld [vmem:[#allocation2 + $0x3] sm:$0xff]  ;;  %v328_v4 = vadd.f32 %v320_v53, %v304_v61  ;;  %v245_v12 = vmul.f32 0.13107488, %v237_v8  ;;  %v261_v14 = vld [vmem:[#allocation2 + $0x1a] sm:$0xff] }
  0x2d   : > { %v327_v51 = vadd.f32 %v319_v31, %v303_v43  ;;  %v306_v0 = vld [vmem:[#allocation2 + $0x4] sm:$0xff]  ;;  %v250_v1 = vadd.f32 %v242_v58, %v226_v57  ;;  %v290_v2 = vmul.f32 0.21610594, %v282_v63  ;;  %v285_v15 = vld [vmem:[#allocation2 + $0x1b] sm:$0xff]  ;;  %v269_v19 = vmul.f32 0.19071282, %v261_v14 }
  0x2e   : > { %v330_v6 = vld [vmem:[#allocation2 + $0x5] sm:$0xff]  ;;  %v314_v10 = vmul.f32 0.19071282, %v306_v0  ;;  %v352_v13 = vadd.f32 %v344_v62, %v328_v4  ;;  %v309_v16 = vld [vmem:[#allocation2 + $0x1c] sm:$0xff]  ;;  %v253_v18 = vadd.f32 %v245_v12, %v229_v11  ;;  %v293_v20 = vmul.f32 0.21610594, %v285_v15 }
  0x2f   : > { %v351_v60 = vadd.f32 %v343_v39, %v327_v51  ;;  %v274_v9 = vadd.f32 %v266_v59, %v250_v1  ;;  %v338_v22 = vmul.f32 0.13107488, %v330_v6  ;;  %v354_v23 = vld [vmem:[#allocation2 + $0x6] sm:$0xff]  ;;  %v333_v24 = vld [vmem:[#allocation2 + $0x1d] sm:$0xff]  ;;  %v317_v29 = vmul.f32 0.19071282, %v309_v16 }
  0x30   : > { %v1066_v21 = vadd.f32 %v368_v5, %v352_v13  ;;  %v357_v25 = vld [vmem:[#allocation2 + $0x1e] sm:$0xff]  ;;  %v277_v27 = vadd.f32 %v269_v19, %v253_v18  ;;  %v222_v30 = vld [vmem:[#allocation2 + $0x28] sm:$0xff]  ;;  %v341_v37 = vmul.f32 0.13107488, %v333_v24  ;;  %v362_v40 = vmul.f32 0.07015932, %v354_v23 }
  0x31   : > { %v1062_v3 = vadd.f32 %v367_v48, %v351_v60  ;;  %v298_v17 = vadd.f32 %v290_v2, %v274_v9  ;;  %v238_v31 = vld [vmem:[#allocation2 + $0x29] sm:$0xff]  ;;  %v230_v33 = vmul.f32 0.07015932, %v222_v30  ;;  %v365_v46 = vmul.f32 0.07015932, %v357_v25  ;;  %v225_v49 = vld [vmem:[#allocation2 + $0x40] sm:$0xff] }
  0x32   : > { %v262_v32 = vld [vmem:[#allocation2 + $0x2a] sm:$0xff]  ;;  %398 = vrot.lane.b32.xlu0 %v1066_v21, %s989_s13  ;;  %v246_v34 = vmul.f32 0.13107488, %v238_v31  ;;  %v301_v36 = vadd.f32 %v293_v20, %v277_v27  ;;  %v241_v50 = vld [vmem:[#allocation2 + $0x41] sm:$0xff]  ;;  %v233_v53 = vmul.f32 0.07015932, %v225_v49 }
  0x33   : > { %396 = vrot.lane.b32.xlu1 %v1062_v3, %s989_s13  ;;  %v322_v26 = vadd.f32 %v314_v10, %v298_v17  ;;  %v270_v35 = vmul.f32 0.19071282, %v262_v32  ;;  %v286_v38 = vld [vmem:[#allocation2 + $0x2b] sm:$0xff]  ;;  %v249_v54 = vmul.f32 0.13107488, %v241_v50  ;;  %v265_v57 = vld [vmem:[#allocation2 + $0x42] sm:$0xff] }
  0x34   : > { %v310_v39 = vld [vmem:[#allocation2 + $0x2c] sm:$0xff]  ;;  %v254_v41 = vadd.f32 %v246_v34, %v230_v33  ;;  %v294_v42 = vmul.f32 0.21610594, %v286_v38  ;;  %v325_v45 = vadd.f32 %v317_v29, %v301_v36  ;;  %v289_v58 = vld [vmem:[#allocation2 + $0x43] sm:$0xff]  ;;  %v273_v62 = vmul.f32 0.19071282, %v265_v57 }
  0x35   : > { %v334_v43 = vld [vmem:[#allocation2 + $0x2d] sm:$0xff]  ;;  %v346_v44 = vadd.f32 %v338_v22, %v322_v26  ;;  %v318_v48 = vmul.f32 0.19071282, %v310_v39  ;;  %v313_v59 = vld [vmem:[#allocation2 + $0x44] sm:$0xff]  ;;  %v257_v61 = vadd.f32 %v249_v54, %v233_v53  ;;  %v297_v63 = vmul.f32 0.21610594, %v289_v58 }
  0x36   : > { %414 = vrot.lane.b32.xlu0 %v1054_v28, %s990_s14  ;;  %v278_v51 = vadd.f32 %v270_v35, %v254_v41  ;;  %v358_v52 = vld [vmem:[#allocation2 + $0x2e] sm:$0xff]  ;;  %v349_v55 = vadd.f32 %v341_v37, %v325_v45  ;;  %v342_v56 = vmul.f32 0.13107488, %v334_v43  ;;  %v337_v2 = vld [vmem:[#allocation2 + $0x45] sm:$0xff]  ;;  %v321_v7 = vmul.f32 0.19071282, %v313_v59 }
  0x37   : > { %412 = vrot.lane.b32.xlu1 %v1058_v47, %s990_s14  ;;  %v370_v0 = vadd.f32 %v362_v40, %v346_v44  ;;  %v366_v1 = vmul.f32 0.07015932, %v358_v52  ;;  %v281_v6 = vadd.f32 %v273_v62, %v257_v61  ;;  %v361_v8 = vld [vmem:[#allocation2 + $0x46] sm:$0xff]  ;;  %v345_v11 = vmul.f32 0.13107488, %v337_v2 }
  0x38   : > { %v302_v60 = vadd.f32 %v294_v42, %v278_v51  ;;  %v373_v4 = vadd.f32 %v365_v46, %v349_v55  ;;  %v369_v14 = vmul.f32 0.07015932, %v361_v8 }
  0x39   : > { %v305_v10 = vadd.f32 %v297_v63, %v281_v6 }
  0x3a   : > { %422 = vrot.lane.b32.xlu0 %v1066_v21, %s990_s14  ;;  %v326_v5 = vadd.f32 %v318_v48, %v302_v60 }
  0x3b   : > { %420 = vrot.lane.b32.xlu1 %v1062_v3, %s990_s14  ;;  %v329_v13 = vadd.f32 %v321_v7, %v305_v10 }
  0x3c   : > { %v350_v9 = vadd.f32 %v342_v56, %v326_v5 }
  0x3d   : > { %v353_v15 = vadd.f32 %v345_v11, %v329_v13 }
  0x3e   : > { %386 = vrot.lane.b32.xlu0 %v370_v0, %s989_s13  ;;  %v374_v12 = vadd.f32 %v366_v1, %v350_v9 }
  0x3f   : > { %436 = vrot.lane.b32.xlu1 %v1058_v47, %s991_s15  ;;  %v377_v16 = vadd.f32 %v369_v14, %v353_v15 }
  0x42   : > { %394 = vrot.lane.b32.xlu0 %v374_v12, %s989_s13 }
  0x43   : > { %392 = vrot.lane.b32.xlu1 %v373_v4, %s989_s13 }
  0x46   : > { %410 = vrot.lane.b32.xlu0 %v370_v0, %s990_s14 }
  0x47   : > { %400 = vrot.lane.b32.xlu1 %v377_v16, %s989_s13 }
  0x4a   : > { %418 = vrot.lane.b32.xlu0 %v374_v12, %s990_s14 }
  0x4b   : > { %416 = vrot.lane.b32.xlu1 %v373_v4, %s990_s14 }
  0x4e   : > { %434 = vrot.lane.b32.xlu0 %v370_v0, %s991_s15 }
  0x4f   : > { %424 = vrot.lane.b32.xlu1 %v377_v16, %s990_s14 }
  0x52   : > { %438 = vrot.lane.b32.xlu0 %v1054_v28, %s991_s15 }
  0x53   : > { %440 = vrot.lane.b32.xlu1 %v373_v4, %s991_s15 }
  0x56   : > { %442 = vrot.lane.b32.xlu0 %v374_v12, %s991_s15 }
  0x57   : > { %444 = vrot.lane.b32.xlu1 %v1062_v3, %s991_s15 }
  0x5a   : > { %446 = vrot.lane.b32.xlu0 %v1066_v21, %s991_s15 }
  0x5b   : > { %448 = vrot.lane.b32.xlu1 %v377_v16, %s991_s15 }
  0x5e   : > { %458 = vrot.lane.b32.xlu0 %v370_v0, %s992_s16 }
  0x5f   : > { %460 = vrot.lane.b32.xlu1 %v1058_v47, %s992_s16 }
  0x62   : > { %462 = vrot.lane.b32.xlu0 %v1054_v28, %s992_s16 }
  0x63   : > { %464 = vrot.lane.b32.xlu1 %v373_v4, %s992_s16 }
  0x66   : > { %466 = vrot.lane.b32.xlu0 %v374_v12, %s992_s16 }
  0x67   : > { %468 = vrot.lane.b32.xlu1 %v1062_v3, %s992_s16 }
  0x6a   : > { %470 = vrot.lane.b32.xlu0 %v1066_v21, %s992_s16 }
  0x6b   : > { %472 = vrot.lane.b32.xlu1 %v377_v16, %s992_s16 }
  0x6e   : > { %482 = vrot.lane.b32.xlu0 %v370_v0, %s993_s17 }
  0x6f   : > { %484 = vrot.lane.b32.xlu1 %v1058_v47, %s993_s17 }
  0x72   : > { %486 = vrot.lane.b32.xlu0 %v1054_v28, %s993_s17 }
  0x73   : > { %488 = vrot.lane.b32.xlu1 %v373_v4, %s993_s17 }
  0x76   : > { %490 = vrot.lane.b32.xlu0 %v374_v12, %s993_s17 }
  0x77   : > { %492 = vrot.lane.b32.xlu1 %v1062_v3, %s993_s17 }
  0x7a   : > { %494 = vrot.lane.b32.xlu0 %v1066_v21, %s993_s17 }
  0x7b   : > { %496 = vrot.lane.b32.xlu1 %v377_v16, %s993_s17 }
  0x7e   : > { %506 = vrot.lane.b32.xlu0 %v370_v0, %s994_s18 }
  0x7f   : > { %508 = vrot.lane.b32.xlu1 %v1058_v47, %s994_s18 }
  0x82   : > { %510 = vrot.lane.b32.xlu0 %v1054_v28, %s994_s18 }
  0x83   : > { %512 = vrot.lane.b32.xlu1 %v373_v4, %s994_s18 }
  0x86   : > { %514 = vrot.lane.b32.xlu0 %v374_v12, %s994_s18 }
  0x87   : > { %516 = vrot.lane.b32.xlu1 %v1062_v3, %s994_s18 }
  0x8a   : > { %518 = vrot.lane.b32.xlu0 %v1066_v21, %s994_s18 }
  0x8b   : > { %520 = vrot.lane.b32.xlu1 %v377_v16, %s994_s18 }
  0x8e   : > { %530 = vrot.lane.b32.xlu0 %v370_v0, %s995_s19 }
  0x8f   : > { %532 = vrot.lane.b32.xlu1 %v1058_v47, %s995_s19 }
  0x92   : > { %534 = vrot.lane.b32.xlu0 %v1054_v28, %s995_s19 }
  0x93   : > { %536 = vrot.lane.b32.xlu1 %v373_v4, %s995_s19 }
  0x96   : > { %538 = vrot.lane.b32.xlu0 %v374_v12, %s995_s19 }
  0x97   : > { %540 = vrot.lane.b32.xlu1 %v1062_v3, %s995_s19 }
  0x9a   : > { %542 = vrot.lane.b32.xlu0 %v1066_v21, %s995_s19 }
  0x9b   : > { %544 = vrot.lane.b32.xlu1 %v377_v16, %s995_s19 }
  0x9d   : > { %v1106_v17 = vpop.permute.xlu1 %390 }
  0x9e   : > { %v389_v18 = vpop.permute.xlu0 %388 }
  0xa4   : > { %v1110_v20 = vpop.permute.xlu0 %398 }
  0xa5   : > { %v1108_v19 = vpop.permute.xlu1 %396 }
  0xa8   : > { %v1112_v23 = vpop.permute.xlu0 %414 }
  0xa9   : > { %v413_v22 = vpop.permute.xlu1 %412  ;;  %v557_v16 = vsel %vm554_vm7, %v1106_v17, %v1112_v23 }
  0xaa   : > { %v556_v2 = vsel %vm554_vm7, %v389_v18, %v413_v22 }
  0xac   : > { %v1116_v24 = vpop.permute.xlu0 %422 }
  0xad   : > { %v1114_v47 = vpop.permute.xlu1 %420 }
  0xb0   : > { %v387_v3 = vpop.permute.xlu0 %386 }
  0xb1   : > { %v437_v28 = vpop.permute.xlu1 %436 }
  0xb2   : > { %v565_v5 = vsel %vm563_vm8, %v556_v2, %v437_v28 }
  0xb4   : > { %v395_v26 = vpop.permute.xlu0 %394 }
  0xb5   : > { %v393_v25 = vpop.permute.xlu1 %392 }
  0xb8   : > { %v411_v21 = vpop.permute.xlu0 %410 }
  0xb9   : > { %v401_v27 = vpop.permute.xlu1 %400  ;;  %v555_v29 = vsel %vm554_vm7, %v387_v3, %v411_v21 }
  0xbc   : > { %v419_v32 = vpop.permute.xlu0 %418 }
  0xbd   : > { %v417_v30 = vpop.permute.xlu1 %416  ;;  %v1121_v33 = vsel %vm554_vm7, %v395_v26, %v419_v32 }
  0xbe   : > { %v558_v31 = vsel %vm554_vm7, %v393_v25, %v417_v30 }
  0xc0   : > { %v435_v36 = vpop.permute.xlu0 %434 }
  0xc1   : > { %v425_v34 = vpop.permute.xlu1 %424  ;;  %v564_v8 = vsel %vm563_vm8, %v555_v29, %v435_v36 }
  0xc2   : > { %v1124_v35 = vsel %vm554_vm7, %v401_v27, %v425_v34  ;;  %v560_v27 = vsel %vm554_vm7, %v1108_v19, %v1114_v47 }
  0xc4   : > { %v439_v38 = vpop.permute.xlu0 %438 }
  0xc5   : > { %v441_v37 = vpop.permute.xlu1 %440  ;;  %v566_v3 = vsel %vm563_vm8, %v557_v16, %v439_v38 }
  0xc6   : > { %v567_v13 = vsel %vm563_vm8, %v558_v31, %v441_v37 }
  0xc8   : > { %v1126_v40 = vpop.permute.xlu0 %442 }
  0xc9   : > { %v445_v39 = vpop.permute.xlu1 %444  ;;  %v568_v47 = vsel %vm563_vm8, %v1121_v33, %v1126_v40  ;;  %v561_v40 = vsel %vm554_vm7, %v1110_v20, %v1116_v24 }
  0xca   : > { %v569_v29 = vsel %vm563_vm8, %v560_v27, %v445_v39 }
  0xcc   : > { %v1130_v42 = vpop.permute.xlu0 %446 }
  0xcd   : > { %v1128_v41 = vpop.permute.xlu1 %448 }
  0xd0   : > { %v459_v44 = vpop.permute.xlu0 %458 }
  0xd1   : > { %v461_v43 = vpop.permute.xlu1 %460  ;;  %v573_v10 = vsel %vm572_vm9, %v564_v8, %v459_v44  ;;  %v571_v44 = vsel %vm563_vm8, %v1124_v35, %v1128_v41  ;;  %v570_v41 = vsel %vm563_vm8, %v561_v40, %v1130_v42 }
  0xd2   : > { %v574_v6 = vsel %vm572_vm9, %v565_v5, %v461_v43 }
  0xd4   : > { %v463_v46 = vpop.permute.xlu0 %462 }
  0xd5   : > { %v465_v45 = vpop.permute.xlu1 %464  ;;  %v575_v21 = vsel %vm572_vm9, %v566_v3, %v463_v46 }
  0xd6   : > { %v576_v18 = vsel %vm572_vm9, %v567_v13, %v465_v45 }
  0xd8   : > { %v467_v49 = vpop.permute.xlu0 %466 }
  0xd9   : > { %v469_v48 = vpop.permute.xlu1 %468  ;;  %v577_v38 = vsel %vm572_vm9, %v568_v47, %v467_v49 }
  0xda   : > { %v578_v32 = vsel %vm572_vm9, %v569_v29, %v469_v48 }
  0xdc   : > { %v1134_v51 = vpop.permute.xlu0 %470 }
  0xdd   : > { %v1132_v50 = vpop.permute.xlu1 %472  ;;  %v579_v20 = vsel %vm572_vm9, %v570_v41, %v1134_v51 }
  0xde   : > { %v580_v48 = vsel %vm572_vm9, %v571_v44, %v1132_v50 }
  0xe0   : > { %v483_v53 = vpop.permute.xlu0 %482 }
  0xe1   : > { %v485_v52 = vpop.permute.xlu1 %484  ;;  %v582_v14 = vsel %vm581_vm10, %v573_v10, %v483_v53 }
  0xe2   : > { %v583_v9 = vsel %vm581_vm10, %v574_v6, %v485_v52 }
  0xe4   : > { %v487_v55 = vpop.permute.xlu0 %486 }
  0xe5   : > { %v489_v54 = vpop.permute.xlu1 %488  ;;  %v584_v30 = vsel %vm581_vm10, %v575_v21, %v487_v55 }
  0xe6   : > { %v585_v25 = vsel %vm581_vm10, %v576_v18, %v489_v54 }
  0xe8   : > { %v491_v57 = vpop.permute.xlu0 %490 }
  0xe9   : > { %v493_v56 = vpop.permute.xlu1 %492  ;;  %v586_v45 = vsel %vm581_vm10, %v577_v38, %v491_v57 }
  0xea   : > { %v587_v36 = vsel %vm581_vm10, %v578_v32, %v493_v56 }
  0xec   : > { %v1138_v59 = vpop.permute.xlu0 %494 }
  0xed   : > { %v1136_v58 = vpop.permute.xlu1 %496  ;;  %v588_v55 = vsel %vm581_vm10, %v579_v20, %v1138_v59 }
  0xee   : > { %v589_v53 = vsel %vm581_vm10, %v580_v48, %v1136_v58 }
  0xf0   : > { %v507_v61 = vpop.permute.xlu0 %506 }
  0xf1   : > { %v509_v60 = vpop.permute.xlu1 %508  ;;  %v591_v22 = vsel %vm590_vm11, %v582_v14, %v507_v61 }
  0xf2   : > { %v592_v11 = vsel %vm590_vm11, %v583_v9, %v509_v60 }
  0xf4   : > { %v511_v63 = vpop.permute.xlu0 %510 }
  0xf5   : > { %v513_v62 = vpop.permute.xlu1 %512  ;;  %v593_v34 = vsel %vm590_vm11, %v584_v30, %v511_v63 }
  0xf6   : > { %v594_v17 = vsel %vm590_vm11, %v585_v25, %v513_v62 }
  0xf8   : > { %v515_v1 = vpop.permute.xlu0 %514 }
  0xf9   : > { %v517_v0 = vpop.permute.xlu1 %516  ;;  %v595_v49 = vsel %vm590_vm11, %v586_v45, %v515_v1 }
  0xfa   : > { %v596_v39 = vsel %vm590_vm11, %v587_v36, %v517_v0 }
  0xfc   : > { %v519_v7 = vpop.permute.xlu0 %518 }
  0xfd   : > { %v521_v4 = vpop.permute.xlu1 %520  ;;  %v597_v56 = vsel %vm590_vm11, %v588_v55, %v519_v7 }
  0xfe   : > { %v598_v24 = vsel %vm590_vm11, %v589_v53, %v521_v4 }
 0x100   : > { %v531_v28 = vpop.permute.xlu0 %530 }
 0x101   : > { %v533_v12 = vpop.permute.xlu1 %532  ;;  %v600_v26 = vsel %vm599_vm12, %v591_v22, %v531_v28 }
 0x102   : > { %v601_v15 = vsel %vm599_vm12, %v592_v11, %v533_v12  ;;  %609 = vst.msk [vmem:[#allocation3] sm:$0xff] %vm608_vm13, %v600_v26 }
 0x103   : > { %610 = vst.msk [vmem:[#allocation3 + $0x8] sm:$0xff] %vm608_vm13, %v601_v15 }
 0x104   : > { %v535_v19 = vpop.permute.xlu0 %534 }
 0x105   : > { %v537_v23 = vpop.permute.xlu1 %536  ;;  %v602_v37 = vsel %vm599_vm12, %v593_v34, %v535_v19 }
 0x106   : > { %v603_v31 = vsel %vm599_vm12, %v594_v17, %v537_v23  ;;  %611 = vst.msk [vmem:[#allocation3 + $0x10] sm:$0xff] %vm608_vm13, %v602_v37 }
 0x107   : > { %612 = vst.msk [vmem:[#allocation3 + $0x18] sm:$0xff] %vm608_vm13, %v603_v31 }
 0x108   : > { %v539_v52 = vpop.permute.xlu0 %538 }
 0x109   : > { %v541_v43 = vpop.permute.xlu1 %540  ;;  %v604_v54 = vsel %vm599_vm12, %v595_v49, %v539_v52  ;;  %v617_v12 = vld [vmem:[#allocation3] sm:$0xff] }
 0x10a   : > { %v605_v46 = vsel %vm599_vm12, %v596_v39, %v541_v43  ;;  %v1184_v33 = vld [vmem:[#allocation3 + $0x8] sm:$0xff]  ;;  %613 = vst.msk [vmem:[#allocation3 + $0x20] sm:$0xff] %vm608_vm13, %v604_v54  ;;  %v633_v14 = vmul.f32 0.13107488, %v617_v12  ;;  %v681_v28 = vmul.f32 0.19071282, %v617_v12 }
 0x10b   : > { %614 = vst.msk [vmem:[#allocation3 + $0x28] sm:$0xff] %vm608_vm13, %v605_v46  ;;  %v1194_v35 = vmul.f32 0.13107488, %v1184_v33  ;;  %v682_v62 = vmul.f32 0.19071282, %v1184_v33 }
 0x10c   : > { %v543_v57 = vpop.permute.xlu0 %542  ;;  %v730_v4 = vmul.f32 0.21610594, %v1184_v33  ;;  %v729_v27 = vmul.f32 0.21610594, %v617_v12  ;;  %v626_v17 = vmul.f32 0.07015932, %v1184_v33 }
 0x10d   : > { %v545_v50 = vpop.permute.xlu1 %544  ;;  %651 = vrot.lane.b32.xlu1 %v1194_v35, %s990_s14  ;;  %v606_v51 = vsel %vm599_vm12, %v597_v56, %v543_v57  ;;  %v1213_v58 = vld [vmem:[#allocation3 + $0x10] sm:$0xff]  ;;  %v625_v29 = vmul.f32 0.07015932, %v617_v12 }
 0x10e   : > { %v607_v42 = vsel %vm599_vm12, %v598_v24, %v545_v50  ;;  %615 = vst.msk [vmem:[#allocation3 + $0x30] sm:$0xff] %vm608_vm13, %v606_v51  ;;  %v1217_v60 = vmul.f32 0.13107488, %v1213_v58  ;;  %v683_v2 = vmul.f32 0.19071282, %v1213_v58  ;;  %v620_v8 = vld [vmem:[#allocation3 + $0x18] sm:$0xff] }
 0x10f   : > { %616 = vst.msk [vmem:[#allocation3 + $0x38] sm:$0xff] %vm608_vm13, %v607_v42  ;;  %v731_v7 = vmul.f32 0.21610594, %v1213_v58  ;;  %v636_v10 = vmul.f32 0.13107488, %v620_v8 }
 0x110   : > { %653 = vrot.lane.b32.xlu0 %v1217_v60, %s990_s14  ;;  %v684_v16 = vmul.f32 0.19071282, %v620_v8  ;;  %v732_v3 = vmul.f32 0.21610594, %v620_v8  ;;  %v628_v23 = vmul.f32 0.07015932, %v620_v8 }
 0x111   : > { %v621_v15 = vld [vmem:[#allocation3 + $0x20] sm:$0xff]  ;;  %v627_v31 = vmul.f32 0.07015932, %v1213_v58 }
 0x112   : > { %v1219_v61 = vld [vmem:[#allocation3 + $0x28] sm:$0xff]  ;;  %v637_v18 = vmul.f32 0.13107488, %v621_v15  ;;  %v685_v25 = vmul.f32 0.19071282, %v621_v15 }
 0x113   : > { %v638_v59 = vmul.f32 0.13107488, %v1219_v61  ;;  %v686_v1 = vmul.f32 0.19071282, %v1219_v61  ;;  %v734_v6 = vmul.f32 0.21610594, %v1219_v61 }
 0x114   : > { %v733_v21 = vmul.f32 0.21610594, %v621_v15  ;;  %v630_v30 = vmul.f32 0.07015932, %v1219_v61  ;;  %v1277_v34 = vmul.f32 0.07015932, %v621_v15 }
 0x115   : > { %659 = vrot.lane.b32.xlu1 %v638_v59, %s990_s14  ;;  %v1226_v63 = vld [vmem:[#allocation3 + $0x30] sm:$0xff] }
 0x116   : > { %v1230_v0 = vmul.f32 0.13107488, %v1226_v63  ;;  %v687_v5 = vmul.f32 0.19071282, %v1226_v63  ;;  %v735_v9 = vmul.f32 0.21610594, %v1226_v63 }
 0x117   : > { %v624_v11 = vld [vmem:[#allocation3 + $0x38] sm:$0xff]  ;;  %v631_v19 = vmul.f32 0.07015932, %v1226_v63 }
 0x118   : > { %661 = vrot.lane.b32.xlu0 %v1230_v0, %s990_s14  ;;  %v640_v13 = vmul.f32 0.13107488, %v624_v11  ;;  %v688_v22 = vmul.f32 0.19071282, %v624_v11  ;;  %v736_v26 = vmul.f32 0.21610594, %v624_v11 }
 0x119   : > { %699 = vrot.lane.b32.xlu1 %v682_v62, %s996_s20  ;;  %v1274_v32 = vmul.f32 0.07015932, %v624_v11 }
 0x11c   : > { %701 = vrot.lane.b32.xlu0 %v683_v2, %s996_s20 }
 0x11d   : > { %707 = vrot.lane.b32.xlu1 %v686_v1, %s996_s20 }
 0x120   : > { %709 = vrot.lane.b32.xlu0 %v687_v5, %s996_s20 }
 0x121   : > { %747 = vrot.lane.b32.xlu1 %v730_v4, %s989_s13 }
 0x124   : > { %749 = vrot.lane.b32.xlu0 %v731_v7, %s989_s13 }
 0x125   : > { %755 = vrot.lane.b32.xlu1 %v734_v6, %s989_s13 }
 0x128   : > { %757 = vrot.lane.b32.xlu0 %v735_v9, %s989_s13 }
 0x129   : > { %779 = vrot.lane.b32.xlu1 %v682_v62, %s997_s21 }
 0x12c   : > { %781 = vrot.lane.b32.xlu0 %v683_v2, %s997_s21 }
 0x12d   : > { %655 = vrot.lane.b32.xlu1 %v636_v10, %s990_s14 }
 0x130   : > { %649 = vrot.lane.b32.xlu0 %v633_v14, %s990_s14 }
 0x131   : > { %663 = vrot.lane.b32.xlu1 %v640_v13, %s990_s14 }
 0x134   : > { %657 = vrot.lane.b32.xlu0 %v637_v18, %s990_s14 }
 0x135   : > { %703 = vrot.lane.b32.xlu1 %v684_v16, %s996_s20 }
 0x138   : > { %697 = vrot.lane.b32.xlu0 %v681_v28, %s996_s20 }
 0x139   : > { %711 = vrot.lane.b32.xlu1 %v688_v22, %s996_s20 }
 0x13c   : > { %705 = vrot.lane.b32.xlu0 %v685_v25, %s996_s20 }
 0x13d   : > { %751 = vrot.lane.b32.xlu1 %v732_v3, %s989_s13 }
 0x140   : > { %745 = vrot.lane.b32.xlu0 %v729_v27, %s989_s13 }
 0x141   : > { %759 = vrot.lane.b32.xlu1 %v736_v26, %s989_s13 }
 0x144   : > { %753 = vrot.lane.b32.xlu0 %v733_v21, %s989_s13 }
 0x145   : > { %783 = vrot.lane.b32.xlu1 %v684_v16, %s997_s21 }
 0x148   : > { %777 = vrot.lane.b32.xlu0 %v681_v28, %s997_s21 }
 0x149   : > { %787 = vrot.lane.b32.xlu1 %v686_v1, %s997_s21 }
 0x14c   : > { %785 = vrot.lane.b32.xlu0 %v685_v25, %s997_s21 }
 0x14d   : > { %791 = vrot.lane.b32.xlu1 %v688_v22, %s997_s21 }
 0x150   : > { %789 = vrot.lane.b32.xlu0 %v687_v5, %s997_s21 }
 0x151   : > { %811 = vrot.lane.b32.xlu1 %v1194_v35, %s998_s22 }
 0x154   : > { %809 = vrot.lane.b32.xlu0 %v633_v14, %s998_s22 }
 0x155   : > { %815 = vrot.lane.b32.xlu1 %v636_v10, %s998_s22 }
 0x158   : > { %813 = vrot.lane.b32.xlu0 %v1217_v60, %s998_s22 }
 0x159   : > { %819 = vrot.lane.b32.xlu1 %v638_v59, %s998_s22 }
 0x15c   : > { %817 = vrot.lane.b32.xlu0 %v637_v18, %s998_s22 }
 0x15d   : > { %823 = vrot.lane.b32.xlu1 %v640_v13, %s998_s22 }
 0x160   : > { %821 = vrot.lane.b32.xlu0 %v1230_v0, %s998_s22 }
 0x161   : > { %851 = vrot.lane.b32.xlu1 %v626_v17, %s999_s23 }
 0x164   : > { %849 = vrot.lane.b32.xlu0 %v625_v29, %s999_s23 }
 0x165   : > { %855 = vrot.lane.b32.xlu1 %v628_v23, %s999_s23 }
 0x168   : > { %853 = vrot.lane.b32.xlu0 %v627_v31, %s999_s23 }
 0x169   : > { %859 = vrot.lane.b32.xlu1 %v630_v30, %s999_s23 }
 0x16c   : > { %857 = vrot.lane.b32.xlu0 %v1277_v34, %s999_s23 }
 0x16d   : > { %863 = vrot.lane.b32.xlu1 %v1274_v32, %s999_s23 }
 0x170   : > { %861 = vrot.lane.b32.xlu0 %v631_v19, %s999_s23 }
 0x17f   : > { %v652_v47 = vpop.permute.xlu1 %651 }
 0x180   : > { %v674_v36 = vadd.f32 %v652_v47, %v626_v17 }
 0x182   : > { %v654_v37 = vpop.permute.xlu0 %653 }
 0x183   : > { %v675_v38 = vadd.f32 %v654_v37, %v627_v31 }
 0x187   : > { %v660_v39 = vpop.permute.xlu1 %659 }
 0x188   : > { %v678_v43 = vadd.f32 %v660_v39, %v630_v30 }
 0x18a   : > { %v662_v46 = vpop.permute.xlu0 %661 }
 0x18b   : > { %v700_v44 = vpop.permute.xlu1 %699  ;;  %v679_v33 = vadd.f32 %v662_v46, %v631_v19 }
 0x18c   : > { %v722_v45 = vadd.f32 %v700_v44, %v674_v36 }
 0x18e   : > { %v702_v49 = vpop.permute.xlu0 %701 }
 0x18f   : > { %v708_v40 = vpop.permute.xlu1 %707  ;;  %v723_v52 = vadd.f32 %v702_v49, %v675_v38 }
 0x190   : > { %v726_v48 = vadd.f32 %v708_v40, %v678_v43 }
 0x192   : > { %v710_v41 = vpop.permute.xlu0 %709 }
 0x193   : > { %v748_v35 = vpop.permute.xlu1 %747  ;;  %v727_v53 = vadd.f32 %v710_v41, %v679_v33 }
 0x194   : > { %v770_v15 = vadd.f32 %v748_v35, %v722_v45 }
 0x196   : > { %v750_v20 = vpop.permute.xlu0 %749 }
 0x197   : > { %v756_v54 = vpop.permute.xlu1 %755  ;;  %v771_v38 = vadd.f32 %v750_v20, %v723_v52 }
 0x198   : > { %v774_v47 = vadd.f32 %v756_v54, %v726_v48 }
 0x19a   : > { %v758_v50 = vpop.permute.xlu0 %757 }
 0x19b   : > { %v780_v24 = vpop.permute.xlu1 %779  ;;  %v1281_v55 = vadd.f32 %v758_v50, %v727_v53 }
 0x19c   : > { %v802_v22 = vadd.f32 %v780_v24, %v770_v15 }
 0x19e   : > { %v782_v56 = vpop.permute.xlu0 %781 }
 0x19f   : > { %v656_v42 = vpop.permute.xlu1 %655  ;;  %v803_v40 = vadd.f32 %v782_v56, %v771_v38 }
 0x1a0   : > { %v676_v16 = vadd.f32 %v656_v42, %v628_v23 }
 0x1a2   : > { %v650_v51 = vpop.permute.xlu0 %649 }
 0x1a3   : > { %v664_v57 = vpop.permute.xlu1 %663  ;;  %v673_v28 = vadd.f32 %v650_v51, %v625_v29 }
 0x1a4   : > { %v680_v29 = vadd.f32 %v664_v57, %v1274_v32 }
 0x1a6   : > { %v658_v60 = vpop.permute.xlu0 %657 }
 0x1a7   : > { %v704_v58 = vpop.permute.xlu1 %703  ;;  %v677_v39 = vadd.f32 %v658_v60, %v1277_v34 }
 0x1a8   : > { %v724_v3 = vadd.f32 %v704_v58, %v676_v16 }
 0x1aa   : > { %v698_v59 = vpop.permute.xlu0 %697 }
 0x1ab   : > { %v712_v61 = vpop.permute.xlu1 %711  ;;  %v721_v26 = vadd.f32 %v698_v59, %v673_v28 }
 0x1ac   : > { %v728_v44 = vadd.f32 %v712_v61, %v680_v29 }
 0x1ae   : > { %v706_v63 = vpop.permute.xlu0 %705 }
 0x1af   : > { %v752_v62 = vpop.permute.xlu1 %751  ;;  %v725_v48 = vadd.f32 %v706_v63, %v677_v39 }
 0x1b0   : > { %v772_v27 = vadd.f32 %v752_v62, %v724_v3 }
 0x1b2   : > { %v746_v1 = vpop.permute.xlu0 %745 }
 0x1b3   : > { %v760_v0 = vpop.permute.xlu1 %759  ;;  %v769_v30 = vadd.f32 %v746_v1, %v721_v26 }
 0x1b4   : > { %v776_v35 = vadd.f32 %v760_v0, %v728_v44 }
 0x1b6   : > { %v754_v4 = vpop.permute.xlu0 %753 }
 0x1b7   : > { %v784_v2 = vpop.permute.xlu1 %783  ;;  %v773_v52 = vadd.f32 %v754_v4, %v725_v48 }
 0x1b8   : > { %v804_v31 = vadd.f32 %v784_v2, %v772_v27 }
 0x1ba   : > { %v778_v6 = vpop.permute.xlu0 %777 }
 0x1bb   : > { %v788_v5 = vpop.permute.xlu1 %787  ;;  %v801_v36 = vadd.f32 %v778_v6, %v769_v30 }
 0x1bc   : > { %v806_v45 = vadd.f32 %v788_v5, %v774_v47 }
 0x1be   : > { %v786_v8 = vpop.permute.xlu0 %785 }
 0x1bf   : > { %v792_v7 = vpop.permute.xlu1 %791  ;;  %v805_v50 = vadd.f32 %v786_v8, %v773_v52 }
 0x1c0   : > { %v808_v34 = vadd.f32 %v792_v7, %v776_v35 }
 0x1c2   : > { %v790_v10 = vpop.permute.xlu0 %789 }
 0x1c3   : > { %v812_v9 = vpop.permute.xlu1 %811  ;;  %v807_v61 = vadd.f32 %v790_v10, %v1281_v55 }
 0x1c4   : > { %v834_v21 = vadd.f32 %v812_v9, %v802_v22 }
 0x1c6   : > { %v810_v12 = vpop.permute.xlu0 %809 }
 0x1c7   : > { %v816_v11 = vpop.permute.xlu1 %815  ;;  %v833_v46 = vadd.f32 %v810_v12, %v801_v36 }
 0x1c8   : > { %v836_v37 = vadd.f32 %v816_v11, %v804_v31 }
 0x1ca   : > { %v814_v14 = vpop.permute.xlu0 %813 }
 0x1cb   : > { %v820_v13 = vpop.permute.xlu1 %819  ;;  %v835_v54 = vadd.f32 %v814_v14, %v803_v40 }
 0x1cc   : > { %v838_v32 = vadd.f32 %v820_v13, %v806_v45 }
 0x1ce   : > { %v818_v25 = vpop.permute.xlu0 %817 }
 0x1cf   : > { %v824_v18 = vpop.permute.xlu1 %823  ;;  %v837_v51 = vadd.f32 %v818_v25, %v805_v50 }
 0x1d0   : > { %v840_v42 = vadd.f32 %v824_v18, %v808_v34 }
 0x1d2   : > { %v822_v23 = vpop.permute.xlu0 %821 }
 0x1d3   : > { %v852_v17 = vpop.permute.xlu1 %851  ;;  %v839_v62 = vadd.f32 %v822_v23, %v807_v61 }
 0x1d4   : > { %v874_v19 = vadd.f32 %v852_v17, %v834_v21 }
 0x1d6   : > { %882 = vst.msk [vmem:[%s1288_s26 + $0x8] sm:$0xff] %vm206_vm1, %v874_v19  ;;  %v850_v49 = vpop.permute.xlu0 %849 }
 0x1d7   : > { %v856_v43 = vpop.permute.xlu1 %855  ;;  %v873_v41 = vadd.f32 %v850_v49, %v833_v46 }
 0x1d8   : > { %v876_v33 = vadd.f32 %v856_v43, %v836_v37 }
 0x1d9   : > { %881 = vst.msk [vmem:[%s1288_s26] sm:$0xff] %vm206_vm1, %v873_v41 }
 0x1da   : > { %884 = vst.msk [vmem:[%s1288_s26 + $0x18] sm:$0xff] %vm206_vm1, %v876_v33  ;;  %v854_v24 = vpop.permute.xlu0 %853 }
 0x1db   : > { %v860_v53 = vpop.permute.xlu1 %859  ;;  %v875_v56 = vadd.f32 %v854_v24, %v835_v54 }
 0x1dc   : > { %v878_v20 = vadd.f32 %v860_v53, %v838_v32 }
 0x1dd   : > { %883 = vst.msk [vmem:[%s1288_s26 + $0x10] sm:$0xff] %vm206_vm1, %v875_v56 }
 0x1de   : > { %886 = vst.msk [vmem:[%s1288_s26 + $0x28] sm:$0xff] %vm206_vm1, %v878_v20  ;;  %v858_v60 = vpop.permute.xlu0 %857 }
 0x1df   : > { %v864_v57 = vpop.permute.xlu1 %863  ;;  %v877_v59 = vadd.f32 %v858_v60, %v837_v51 }
 0x1e0   : > { %v880_v58 = vadd.f32 %v864_v57, %v840_v42 }
 0x1e1   : > { %885 = vst.msk [vmem:[%s1288_s26 + $0x20] sm:$0xff] %vm206_vm1, %v877_v59 }
 0x1e2   : > { %888 = vst.msk [vmem:[%s1288_s26 + $0x38] sm:$0xff] %vm206_vm1, %v880_v58  ;;  %v862_v63 = vpop.permute.xlu0 %861 }
 0x1e3   : > { %v879_v0 = vadd.f32 %v862_v63, %v839_v62 }
 0x1e5   : > { %887 = vst.msk [vmem:[%s1288_s26 + $0x30] sm:$0xff] %vm206_vm1, %v879_v0 }
 0x1e6 PF: > { %s11_s6 = sadd.s32 1, %s987_s6  }
 0x1e7   : > { %p8_p4 = scmp.ge.s32.totalorder %s11_s6, 4  }
 0x1e9   :  { %10 = sbr.rel (!%p8_p4) target bundleno = 1 (0x1), region = 54 }

</bundles_post_ra>
